<compile_context>
chip_gen: v6e
topology: v6e:2x2x1
jax: 0.10.0
libtpu: 0.0.40
codegen_flags: <defaults>
</compile_context>

<pallas_src>
import jax
import jax.numpy as jnp
import numpy as np
from jax.experimental import pallas as pl
from jax.experimental.pallas import tpu as pltpu

_LANES = 128
_HEAD_PAD = 8  # fused head output rows, padded to a full sublane group


# -----------------------------------------------------------------------------
# Kernel (transposed: batch on the lane axis)
# -----------------------------------------------------------------------------
def _make_kernel(n_layers, negative_slope):
    """Fused kernel: n_layers x (Linear + LeakyReLU) + fused padded head.

    Ref layout (all transposed, batch on lanes):
        x_ref (L, tb),
        W'^T_0 .. W'^T_{n-1}            each (out_i, in_i),
        b'_0   .. b'_{n-1}              each (out_i, 1),
        W_head^T (8, H), b_head (8, 1),
        out_ref (8, tb)
    """

    def kernel(x_ref, *refs):
        w_refs = refs[:n_layers]
        b_refs = refs[n_layers:2 * n_layers]
        wh_ref = refs[2 * n_layers]
        bh_ref = refs[2 * n_layers + 1]
        out_ref = refs[2 * n_layers + 2]

        h = x_ref[...]  # (L, tb) f32
        for i in range(n_layers):
            # (out_i, in_i) @ (in_i, tb) -> (out_i, tb); bias broadcasts on lanes.
            h = (jnp.dot(w_refs[i][...], h, preferred_element_type=jnp.float32)
                 + b_refs[i][...])
            h = jnp.where(h >= 0.0, h, negative_slope * h)  # LeakyReLU

        # Fused heads: rows 0-1 = center, rows 2-3 = center_logvar, 4-7 = pad.
        out_ref[...] = (
            jnp.dot(wh_ref[...], h, preferred_element_type=jnp.float32)
            + bh_ref[...]
        )

    return kernel


# -----------------------------------------------------------------------------
# Parameter folding (done ONCE, outside the per-call path, in float64)
# -----------------------------------------------------------------------------
def fold_decoder_params(params, *, eps=1e-5):
    """Fold eval-mode BN into the Linears, transpose to (out, in), fuse heads."""
    wts, bts = [], []
    for (w, b, g, be, m, v) in params["layers"]:
        w64 = np.asarray(w, np.float64)          # (in, out)
        b64 = np.asarray(b, np.float64)
        g64 = np.asarray(g, np.float64)
        be64 = np.asarray(be, np.float64)
        m64 = np.asarray(m, np.float64)
        v64 = np.asarray(v, np.float64)
        scale = g64 / np.sqrt(v64 + eps)          # (out,)
        wt = (w64 * scale[None, :]).T             # (out, in)
        bt = (b64 - m64) * scale + be64           # (out,)
        wts.append(jnp.asarray(wt, jnp.float32))
        bts.append(jnp.asarray(bt[:, None], jnp.float32))   # (out, 1)

    H = wts[-1].shape[0]  # == hidden_dimensions[0]
    w_head = np.zeros((_HEAD_PAD, H), np.float64)
    w_head[0:2, :] = np.asarray(params["wc"], np.float64).T
    w_head[2:4, :] = np.asarray(params["wlv"], np.float64).T
    b_head = np.zeros((_HEAD_PAD, 1), np.float64)
    b_head[0:2, 0] = np.asarray(params["bc"], np.float64)
    b_head[2:4, 0] = np.asarray(params["blv"], np.float64)

    return {
        "wts": tuple(wts),
        "bts": tuple(bts),
        "w_head": jnp.asarray(w_head, jnp.float32),
        "b_head": jnp.asarray(b_head, jnp.float32),
    }


# -----------------------------------------------------------------------------
# Pure-XLA fast path for tiny batches (launch overhead dominates there)
# -----------------------------------------------------------------------------
def _xla_forward(x, folded, *, negative_slope):
    h = x
    for wt, bt in zip(folded["wts"], folded["bts"]):
        h = h @ wt.T + bt[:, 0]
        h = jnp.where(h >= 0.0, h, negative_slope * h)
    out = h @ folded["w_head"].T + folded["b_head"][:, 0]
    return out[:, :2], out[:, 2:4]


# -----------------------------------------------------------------------------
# Forward wrapper
# -----------------------------------------------------------------------------
def ball_pose_vae_decoder_forward(x, folded, *, negative_slope=0.01,
                                  batch_tile=8192, xla_batch_threshold=1024):
    """Runs the full decoder forward in a single fused Pallas kernel.

    Weights (a few KiB) stay VMEM-resident across the batch grid; only x^T and
    the (8, B) transposed head output stream.  Batch lives on the lane axis so
    every load/store is lane-dense.
    """
    B, L = x.shape
    n_layers = len(folded["wts"])

    if B <= xla_batch_threshold:
        # Tiny batch: pallas_call launch + DMA setup would dominate.
        return _xla_forward(x, folded, negative_slope=negative_slope)

    # ---- tile selection (lane-aligned, >= 2 grid steps when possible) ------
    b128 = pl.cdiv(B, _LANES) * _LANES
    tb = min(batch_tile, b128)
    tb = pl.cdiv(tb, _LANES) * _LANES
    if (b128 // tb) < 2 and b128 >= 2 * _LANES:
        # Guarantee >= 2 grid steps so v7x's two TensorCores both run.
        tb = pl.cdiv(b128 // 2, _LANES) * _LANES
    b_pad = pl.cdiv(b128, tb) * tb
    grid = (b_pad // tb,)

    # ---- transpose + pad batch onto lanes -----------------------------------
    x_t = x.T                                             # (L, B)
    if b_pad != B:
        x_t = jnp.pad(x_t, ((0, 0), (0, b_pad - B)))      # (L, b_pad)

    kernel = _make_kernel(n_layers, negative_slope)

    in_specs = [pl.BlockSpec((L, tb), lambda i: (0, i))]            # streamed x^T
    for w in folded["wts"]:
        in_specs.append(pl.BlockSpec(w.shape, lambda i: (0, 0)))    # resident W'^T
    for b in folded["bts"]:
        in_specs.append(pl.BlockSpec(b.shape, lambda i: (0, 0)))    # resident b'
    in_specs.append(pl.BlockSpec(folded["w_head"].shape, lambda i: (0, 0)))
    in_specs.append(pl.BlockSpec(folded["b_head"].shape, lambda i: (0, 0)))

    out_t = pl.pallas_call(
        kernel,
        out_shape=jax.ShapeDtypeStruct((_HEAD_PAD, b_pad), jnp.float32),
        grid=grid,
        in_specs=in_specs,
        out_specs=pl.BlockSpec((_HEAD_PAD, tb), lambda i: (0, i)),
        compiler_params=pltpu.CompilerParams(
            dimension_semantics=("parallel",)),   # shards batch across v7x's 2 TCs
    )(x_t, *folded["wts"], *folded["bts"], folded["w_head"], folded["b_head"])

    # Un-transpose / slice off padding (padded columns computed garbage-on-zeros).
    center = out_t[:2, :B].T
    center_logvar = out_t[2:4, :B].T
    return center, center_logvar


# -----------------------------------------------------------------------------
# Pure-JAX reference (mirrors the PyTorch module, eval-mode BN)
# -----------------------------------------------------------------------------
def reference_forward(x, params, *, eps=1e-5, negative_slope=0.01):
    h = x
    for (w, b, g, be, m, v) in params["layers"]:
        h = h @ w + b
        h = (h - m) / jnp.sqrt(v + eps) * g + be
        h = jnp.where(h >= 0.0, h, negative_slope * h)
    center = h @ params["wc"] + params["bc"]
    logvar = h @ params["wlv"] + params["blv"]
    return center, logvar


def init_params(key, latent_space_size, hidden_dimensions):
    """Deterministic synthetic parameters matching the module's shapes."""
    layers = []
    prev = latent_space_size
    k = key
    for dim in reversed(hidden_dimensions):
        k, kw, kb, kg, kbe, km, kv = jax.random.split(k, 7)
        scale = 1.0 / jnp.sqrt(jnp.float32(prev))
        w = jax.random.uniform(kw, (prev, dim), jnp.float32, -scale, scale)
        b = jax.random.uniform(kb, (dim,), jnp.float32, -scale, scale)
        gamma = 1.0 + 0.1 * jax.random.normal(kg, (dim,), jnp.float32)
        beta = 0.1 * jax.random.normal(kbe, (dim,), jnp.float32)
        running_mean = 0.1 * jax.random.normal(km, (dim,), jnp.float32)
        running_var = 1.0 + 0.1 * jax.random.uniform(kv, (dim,), jnp.float32)
        layers.append((w, b, gamma, beta, running_mean, running_var))
        prev = dim

    k, kwc, kbc, kwl, kbl = jax.random.split(k, 5)
    scale = 1.0 / jnp.sqrt(jnp.float32(prev))  # prev == hidden_dimensions[0]
    wc = jax.random.uniform(kwc, (prev, 2), jnp.float32, -scale, scale)
    bc = jax.random.uniform(kbc, (2,), jnp.float32, -scale, scale)
    wlv = jax.random.uniform(kwl, (prev, 2), jnp.float32, -scale, scale)
    blv = jax.random.uniform(kbl, (2,), jnp.float32, -scale, scale)
    return {"layers": layers, "wc": wc, "bc": bc, "wlv": wlv, "blv": blv}


if __name__ == "__main__":
    latent_space_size = 8
    hidden_dimensions = [32, 64]  # decoder runs reversed: 8 -> 64 -> 32 -> heads(2,2)

    key = jax.random.PRNGKey(0)
    pkey, xkey1, xkey2 = jax.random.split(key, 3)
    params = init_params(pkey, latent_space_size, hidden_dimensions)
    folded = fold_decoder_params(params)

    # --- small batch, Pallas path forced (single 128-lane grid step) --------
    x_small = jax.random.normal(xkey1, (8, latent_space_size), jnp.float32)
    c1, lv1 = ball_pose_vae_decoder_forward(x_small, folded, xla_batch_threshold=0)
    jax.block_until_ready((c1, lv1))
    rc1, rlv1 = reference_forward(x_small, params)
    np.testing.assert_allclose(np.asarray(c1), np.asarray(rc1), rtol=1e-4, atol=1e-4)
    np.testing.assert_allclose(np.asarray(lv1), np.asarray(rlv1), rtol=1e-4, atol=1e-4)

    # --- mid batch, Pallas path with a >=2-step grid (exercises "parallel") --
    x_mid = jax.random.normal(xkey2, (512, latent_space_size), jnp.float32)
    c2, lv2 = ball_pose_vae_decoder_forward(x_mid, folded, xla_batch_threshold=0)
    jax.block_until_ready((c2, lv2))
    rc2, rlv2 = reference_forward(x_mid, params)
    np.testing.assert_allclose(np.asarray(c2), np.asarray(rc2), rtol=1e-4, atol=1e-4)
    np.testing.assert_allclose(np.asarray(lv2), np.asarray(rlv2), rtol=1e-4, atol=1e-4)

    # --- small batch, default XLA fast path (overhead-avoiding) --------------
    c3, lv3 = ball_pose_vae_decoder_forward(x_small, folded)
    jax.block_until_ready((c3, lv3))
    np.testing.assert_allclose(np.asarray(c3), np.asarray(rc1), rtol=1e-4, atol=1e-4)
    np.testing.assert_allclose(np.asarray(lv3), np.asarray(rlv1), rtol=1e-4, atol=1e-4)

    print("KERNEL_OK")
</pallas_src>

<mosaic_0001>
module attributes {stable_mosaic.version = 11 : i64} {
  func.func @kernel(%arg0: i32, %arg1: memref<8x128xf32, #tpu.memory_space<vmem>>, %arg2: memref<64x8xf32, #tpu.memory_space<vmem>>, %arg3: memref<32x64xf32, #tpu.memory_space<vmem>>, %arg4: memref<64x1xf32, #tpu.memory_space<vmem>>, %arg5: memref<32x1xf32, #tpu.memory_space<vmem>>, %arg6: memref<8x32xf32, #tpu.memory_space<vmem>>, %arg7: memref<8x1xf32, #tpu.memory_space<vmem>>, %arg8: memref<8x128xf32, #tpu.memory_space<vmem>>) attributes {dimension_semantics = [#tpu.dimension_semantics<parallel>], iteration_bounds = array<i64: 1>, scalar_prefetch = 0 : i64, scratch_operands = 0 : i64, tpu.core_type = #tpu.core_type<tc>, window_params = [{transform_indices = @transform_0, window_bounds = array<i64: 8, 128>}, {pipeline_mode = #tpu.pipeline_mode<synchronous>, transform_indices = @transform_1, window_bounds = array<i64: 64, 8>}, {pipeline_mode = #tpu.pipeline_mode<synchronous>, transform_indices = @transform_2, window_bounds = array<i64: 32, 64>}, {pipeline_mode = #tpu.pipeline_mode<synchronous>, transform_indices = @transform_3, window_bounds = array<i64: 64, 1>}, {pipeline_mode = #tpu.pipeline_mode<synchronous>, transform_indices = @transform_4, window_bounds = array<i64: 32, 1>}, {pipeline_mode = #tpu.pipeline_mode<synchronous>, transform_indices = @transform_5, window_bounds = array<i64: 8, 32>}, {pipeline_mode = #tpu.pipeline_mode<synchronous>, transform_indices = @transform_6, window_bounds = array<i64: 8, 1>}, {transform_indices = @transform_7, window_bounds = array<i64: 8, 128>}]} {
    %c0 = arith.constant 0 : index
    %c0_0 = arith.constant 0 : index
    %0 = vector.load %arg1[%c0, %c0_0] : memref<8x128xf32, #tpu.memory_space<vmem>>, vector<8x128xf32>
    %c0_1 = arith.constant 0 : index
    %c0_2 = arith.constant 0 : index
    %1 = vector.load %arg2[%c0_1, %c0_2] : memref<64x8xf32, #tpu.memory_space<vmem>>, vector<64x8xf32>
    %cst = arith.constant dense<0.000000e+00> : vector<64x128xf32>
    %2 = tpu.matmul %1, %0, %cst {dimension_numbers = #tpu.dot_dimension_numbers<[1], [0], [0], [1], [0, 0, 1, 1], [], []>} : vector<64x8xf32>, vector<8x128xf32>, vector<64x128xf32> -> vector<64x128xf32>
    %c0_3 = arith.constant 0 : index
    %c0_4 = arith.constant 0 : index
    %3 = vector.load %arg4[%c0_3, %c0_4] : memref<64x1xf32, #tpu.memory_space<vmem>>, vector<64x1xf32>
    %4 = vector.broadcast %3 : vector<64x1xf32> to vector<64x128xf32>
    %5 = arith.addf %2, %4 : vector<64x128xf32>
    %cst_5 = arith.constant 0.000000e+00 : f32
    %6 = vector.broadcast %cst_5 : f32 to vector<64x128xf32>
    %7 = arith.cmpf oge, %5, %6 : vector<64x128xf32>
    %cst_6 = arith.constant 0.00999999977 : f32
    %8 = vector.broadcast %cst_6 : f32 to vector<64x128xf32>
    %9 = arith.mulf %8, %5 : vector<64x128xf32>
    %10 = arith.select %7, %5, %9 : vector<64x128xi1>, vector<64x128xf32>
    %c0_7 = arith.constant 0 : index
    %c0_8 = arith.constant 0 : index
    %11 = vector.load %arg3[%c0_7, %c0_8] : memref<32x64xf32, #tpu.memory_space<vmem>>, vector<32x64xf32>
    %cst_9 = arith.constant dense<0.000000e+00> : vector<32x128xf32>
    %12 = tpu.matmul %11, %10, %cst_9 {dimension_numbers = #tpu.dot_dimension_numbers<[1], [0], [0], [1], [0, 0, 1, 1], [], []>} : vector<32x64xf32>, vector<64x128xf32>, vector<32x128xf32> -> vector<32x128xf32>
    %c0_10 = arith.constant 0 : index
    %c0_11 = arith.constant 0 : index
    %13 = vector.load %arg5[%c0_10, %c0_11] : memref<32x1xf32, #tpu.memory_space<vmem>>, vector<32x1xf32>
    %14 = vector.broadcast %13 : vector<32x1xf32> to vector<32x128xf32>
    %15 = arith.addf %12, %14 : vector<32x128xf32>
    %cst_12 = arith.constant 0.000000e+00 : f32
    %16 = vector.broadcast %cst_12 : f32 to vector<32x128xf32>
    %17 = arith.cmpf oge, %15, %16 : vector<32x128xf32>
    %cst_13 = arith.constant 0.00999999977 : f32
    %18 = vector.broadcast %cst_13 : f32 to vector<32x128xf32>
    %19 = arith.mulf %18, %15 : vector<32x128xf32>
    %20 = arith.select %17, %15, %19 : vector<32x128xi1>, vector<32x128xf32>
    %c0_14 = arith.constant 0 : index
    %c0_15 = arith.constant 0 : index
    %21 = vector.load %arg6[%c0_14, %c0_15] : memref<8x32xf32, #tpu.memory_space<vmem>>, vector<8x32xf32>
    %cst_16 = arith.constant dense<0.000000e+00> : vector<8x128xf32>
    %22 = tpu.matmul %21, %20, %cst_16 {dimension_numbers = #tpu.dot_dimension_numbers<[1], [0], [0], [1], [0, 0, 1, 1], [], []>} : vector<8x32xf32>, vector<32x128xf32>, vector<8x128xf32> -> vector<8x128xf32>
    %c0_17 = arith.constant 0 : index
    %c0_18 = arith.constant 0 : index
    %23 = vector.load %arg7[%c0_17, %c0_18] : memref<8x1xf32, #tpu.memory_space<vmem>>, vector<8x1xf32>
    %24 = vector.broadcast %23 : vector<8x1xf32> to vector<8x128xf32>
    %25 = arith.addf %22, %24 : vector<8x128xf32>
    %c0_19 = arith.constant 0 : index
    %c0_20 = arith.constant 0 : index
    %26 = vector.load %arg8[%c0_19, %c0_20] : memref<8x128xf32, #tpu.memory_space<vmem>>, vector<8x128xf32>
    tpu.vector_store %arg8[%c0_19, %c0_20], %25 {strides = array<i32>} : memref<8x128xf32, #tpu.memory_space<vmem>>, vector<8x128xf32>,
    return
  }
  func.func @transform_0(%arg0: i32) -> (i32, i32) {
    %c0_i32 = arith.constant 0 : i32
    %c0_i32_0 = arith.constant 0 : i32
    return %c0_i32, %arg0 : i32, i32
  }
  func.func @transform_1(%arg0: i32) -> (i32, i32) {
    %c0_i32 = arith.constant 0 : i32
    %c0_i32_0 = arith.constant 0 : i32
    %c0_i32_1 = arith.constant 0 : i32
    return %c0_i32, %c0_i32_0 : i32, i32
  }
  func.func @transform_2(%arg0: i32) -> (i32, i32) {
    %c0_i32 = arith.constant 0 : i32
    %c0_i32_0 = arith.constant 0 : i32
    %c0_i32_1 = arith.constant 0 : i32
    return %c0_i32, %c0_i32_0 : i32, i32
  }
  func.func @transform_3(%arg0: i32) -> (i32, i32) {
    %c0_i32 = arith.constant 0 : i32
    %c0_i32_0 = arith.constant 0 : i32
    %c0_i32_1 = arith.constant 0 : i32
    return %c0_i32, %c0_i32_0 : i32, i32
  }
  func.func @transform_4(%arg0: i32) -> (i32, i32) {
    %c0_i32 = arith.constant 0 : i32
    %c0_i32_0 = arith.constant 0 : i32
    %c0_i32_1 = arith.constant 0 : i32
    return %c0_i32, %c0_i32_0 : i32, i32
  }
  func.func @transform_5(%arg0: i32) -> (i32, i32) {
    %c0_i32 = arith.constant 0 : i32
    %c0_i32_0 = arith.constant 0 : i32
    %c0_i32_1 = arith.constant 0 : i32
    return %c0_i32, %c0_i32_0 : i32, i32
  }
  func.func @transform_6(%arg0: i32) -> (i32, i32) {
    %c0_i32 = arith.constant 0 : i32
    %c0_i32_0 = arith.constant 0 : i32
    %c0_i32_1 = arith.constant 0 : i32
    return %c0_i32, %c0_i32_0 : i32, i32
  }
  func.func @transform_7(%arg0: i32) -> (i32, i32) {
    %c0_i32 = arith.constant 0 : i32
    %c0_i32_0 = arith.constant 0 : i32
    return %c0_i32, %arg0 : i32, i32
  }
}

</mosaic_0001>

<bundles_post_ra>
// kernel: tpu_custom_call.1
= control target key start
LH: loop header
LB: loop body
LE: loop exit
PB: predicated region body
PF: predicated region fallthrough
CT: control target
= control target key end

     0   :  { %vm84_vm0 = vcmask 64512   ;;  %v586_v4 = vmov 0   ;;  %s726_s0 = inlined_call_operand.vmem [shape: f32[8,128], index: 0, kind: input, shape index: {}]   ;;  %s727_s1 = inlined_call_operand.vmem [shape: f32[64,8], index: 1, kind: input, shape index: {}]   ;;  %s728_s2 = inlined_call_operand.vmem [shape: f32[32,64], index: 2, kind: input, shape index: {}]   ;;  %s729_s3 = inlined_call_operand.vmem [shape: f32[64,1], index: 3, kind: input, shape index: {}]   ;;  %s730_s4 = inlined_call_operand.vmem [shape: f32[32,1], index: 4, kind: input, shape index: {}]   ;;  %s731_s5 = inlined_call_operand.vmem [shape: f32[8,32], index: 5, kind: input, shape index: {}]   ;;  %s732_s6 = inlined_call_operand.vmem [shape: f32[8,1], index: 6, kind: input, shape index: {}]   ;;  %s733_s7 = inlined_call_operand.hbm [shape: f32[8,128], index: 7, kind: output, shape index: {}]  }
   0x1   :  { %v27_v0 = vld [vmem:[%s726_s0] sm:$0xff]  ;;  %v29_v2 = vld [vmem:[%s727_s1 + $0x8] sm:$0xff]  ;;  %v30_v3 = vld [vmem:[%s727_s1 + $0x10] sm:$0xff]  ;;  %562 = vset.pattern.permute.xlu0 %v586_v4  ;;  %563 = vset.pattern.permute.xlu1 %v586_v4 }
   0x2   :  { %v28_v1 = vld [vmem:[%s727_s1] sm:$0xff]  ;;  %511 = vmatprep.subr.mxu0 %v27_v0  ;;  %v43_v5 = vld [vmem:[%s729_s3 + $0x38] sm:$0xff]  ;;  %v41_v6 = vld [vmem:[%s729_s3 + $0x28] sm:$0xff] }
   0x3   :  { %513 = vmatprep.mubr.msk.f32.mxu0 %vm84_vm0, %v28_v1  ;;  %512 = vmatpush3.msra.mxu0 %v27_v0  ;;  %v31_v7 = vld [vmem:[%s727_s1 + $0x18] sm:$0xff]  ;;  %v32_v8 = vld [vmem:[%s727_s1 + $0x20] sm:$0xff]  ;;  %v42_v9 = vld [vmem:[%s729_s3 + $0x30] sm:$0xff] }
   0x4   :  { %514 = vmatmul.mubr.msk.f32.vlgmr.msra.gmra.mxu0 %vm84_vm0, %v29_v2  ;;  %81 = vperm.xlu0 %562, %v43_v5   ;;  %v40_v10 = vld [vmem:[%s729_s3 + $0x20] sm:$0xff] }
   0x5   :  { %516 = vmatprep.mubr.msk.f32.mxu0 %vm84_vm0, %v30_v3  ;;  %71 = vperm.xlu1 %563, %v41_v6  }
   0x8   :  { %517 = vmatmul.mubr.msk.f32.gmra.mxu0 %vm84_vm0, %v31_v7 }
   0x9   :  { %12 = vsyncpa [#allocation3], 0  ;;  %519 = vmatprep.mubr.msk.f32.mxu0 %vm84_vm0, %v32_v8  ;;  %v33_v11 = vld [vmem:[%s727_s1 + $0x28] sm:$0xff]  ;;  %76 = vperm.xlu0 %562, %v42_v9   ;;  %v34_v12 = vld [vmem:[%s727_s1 + $0x30] sm:$0xff]  ;;  %vm266_vm1 = vcmask 523264   ;;  %v587_v3 = vmov 0.0  }
   0xa   :  { %66 = vperm.xlu1 %563, %v40_v10   ;;  %v39_v13 = vld [vmem:[%s729_s3 + $0x18] sm:$0xff]  ;;  %v38_v14 = vld [vmem:[%s729_s3 + $0x10] sm:$0xff]  ;;  %v37_v16 = vld [vmem:[%s729_s3 + $0x8] sm:$0xff]  ;;  %547 = vmatprep.subr.mxu0 %v587_v3  ;;  %vm588_vm10 = vmmov 0   ;;  %vm383_vm15 = vcmask 261120   ;;  %s589_s25 = smov [#allocation2]  }
   0xb   :  { %v35_v15 = vld [vmem:[%s727_s1 + $0x38] sm:$0xff]  ;;  %v36_v17 = vld [vmem:[%s729_s3] sm:$0xff]  ;;  %v244_v19 = vld [vmem:[%s730_s4 + $0x10] sm:$0xff]  ;;  %s464_s26 = sshll.u32 %s589_s25, 4  ;;  %s465_s26 = int_to_ptr.vmem [resolvable:$true] %s464_s26 }
   0xc   :  { %520 = vmatmul.mubr.msk.f32.gmra.mxu0 %vm84_vm0, %v33_v11  ;;  %v245_v18 = vld [vmem:[%s730_s4 + $0x18] sm:$0xff]  ;;  %v243_v20 = vld [vmem:[%s730_s4 + $0x8] sm:$0xff]  ;;  %v242_v21 = vld [vmem:[%s730_s4] sm:$0xff]  ;;  %s564_s27 = scalar_lea.vmem %s465_s26, 128  ;;  %p569_p1 = scmp.lt.s32.totalorder %s465_s26, %s465_s26 }
   0xd   :  { %522 = vmatprep.mubr.msk.f32.mxu0 %vm84_vm0, %v34_v12  ;;  %61 = vperm.xlu0 %562, %v39_v13   ;;  %v377_v22 = vld [vmem:[%s732_s6] sm:$0xff]  ;;  %v239_v0 = vld [vmem:[%s728_s2 + $0x8] sm:$0xff]  ;;  %v240_v1 = vld [vmem:[%s728_s2 + $0x10] sm:$0xff]  ;;  %p565_p0 = scmp.ne.s32.totalorder %s465_s26, %s564_s27  ;;  %p570_p2 = scmp.lt.s32.totalorder %s564_s27, %s564_s27 }
   0xe   :  { %56 = vperm.xlu1 %563, %v38_v14   ;;  %v238_v23 = vld [vmem:[%s728_s2] sm:$0xff]  ;;  %v241_v2 = vld [vmem:[%s728_s2 + $0x18] sm:$0xff] }
   0xf   :  { %541 = vmatprep.mubr.msk.f32.mxu1 %vm266_vm1, %v238_v23  ;;  %v376_v23 = vld [vmem:[%s731_s5] sm:$0xff]  ;;  %p571_p3 = por %p570_p2, %p569_p1 }
  0x10   :  { %523 = vmatmul.mubr.msk.f32.gmra.mxu0 %vm84_vm0, %v35_v15 }
  0x11   :  { %51 = vperm.xlu0 %562, %v37_v16   ;;  %555 = vmatprep.mubr.msk.f32.mxu0 %vm588_vm10, %v587_v3  ;;  %p572_p4 = pnand %p571_p3, %p565_p0 }
  0x12   :  { %46 = vperm.xlu1 %563, %v36_v17  }
  0x15   :  { %263 = vperm.xlu0 %562, %v245_v18  }
  0x16   :  { %258 = vperm.xlu1 %563, %v244_v19  }
  0x19   :  { %253 = vperm.xlu0 %562, %v243_v20  }
  0x1a   :  { %248 = vperm.xlu1 %563, %v242_v21  }
  0x1d   :  { %380 = vperm.xlu0 %562, %v377_v22  }
  0x7f   :  { %v82_v25 = vpop.permute.xlu0 %81 }
  0x80   :  { %v72_v26 = vpop.permute.xlu1 %71 }
  0x84   :  { %v77_v30 = vpop.permute.xlu0 %76 }
  0x85   :  { %v67_v31 = vpop.permute.xlu1 %66 }
  0x88   :  { %v62_v35 = vpop.permute.xlu0 %61 }
  0x89   :  { %v57_v38 = vpop.permute.xlu1 %56 }
  0x8c   :  { %v52_v50 = vpop.permute.xlu0 %51 }
  0x8d   :  { %v47_v51 = vpop.permute.xlu1 %46 }
  0x90   :  { %v264_v4 = vpop.permute.xlu0 %263 }
  0x91   :  { %v259_v5 = vpop.permute.xlu1 %258 }
  0x94   :  { %v254_v8 = vpop.permute.xlu0 %253 }
  0x95   :  { %v249_v12 = vpop.permute.xlu1 %248 }
  0xc4   :  { %v515_v24 = vpop.f32.mrf.mxu0 }
  0xc5   :  { %v181_v52 = vadd.f32 %v515_v24, %v52_v50 }
  0xc6   :  { %v175_v27 = vpop.f32.mrf.mxu0 }
  0xc7   :  { %v176_v55 = vadd.f32 %v175_v27, %v47_v51  ;;  %v223_v58 = vmul.f32 0.01, %v181_v52  ;;  %vm215_vm8 = vcmp.ge.f32.partialorder %v181_v52, 0.0 }
  0xc8   :  { %v518_v28 = vpop.f32.mrf.mxu0 }
  0xc9   :  { %v191_v43 = vadd.f32 %v518_v28, %v62_v35  ;;  %v222_v60 = vmul.f32 0.01, %v176_v55  ;;  %vm214_vm9 = vcmp.ge.f32.partialorder %v176_v55, 0.0  ;;  %v231_v62 = vsel %vm215_vm8, %v181_v52, %v223_v58 }
  0xca   :  { %v185_v29 = vpop.f32.mrf.mxu0 }
  0xcb   :  { %v186_v47 = vadd.f32 %v185_v29, %v57_v38  ;;  %v225_v53 = vmul.f32 0.01, %v191_v43  ;;  %vm217_vm6 = vcmp.ge.f32.partialorder %v191_v43, 0.0  ;;  %v230_v63 = vsel %vm214_vm9, %v176_v55, %v222_v60 }
  0xcc   :  { %v521_v32 = vpop.f32.mrf.mxu0 }
  0xcd   :  { %v201_v36 = vadd.f32 %v521_v32, %v72_v26  ;;  %v224_v56 = vmul.f32 0.01, %v186_v47  ;;  %vm216_vm7 = vcmp.ge.f32.partialorder %v186_v47, 0.0  ;;  %v233_v59 = vsel %vm217_vm6, %v191_v43, %v225_v53 }
  0xce   :  { %v195_v33 = vpop.f32.mrf.mxu0 }
  0xcf   :  { %v196_v40 = vadd.f32 %v195_v33, %v67_v31  ;;  %v227_v44 = vmul.f32 0.01, %v201_v36  ;;  %vm219_vm4 = vcmp.ge.f32.partialorder %v201_v36, 0.0  ;;  %v232_v61 = vsel %vm216_vm7, %v186_v47, %v224_v56 }
  0xd0   :  { %v524_v34 = vpop.f32.mrf.mxu0 }
  0xd1   :  { %v211_v37 = vadd.f32 %v524_v34, %v82_v25  ;;  %v226_v48 = vmul.f32 0.01, %v196_v40  ;;  %vm218_vm5 = vcmp.ge.f32.partialorder %v196_v40, 0.0  ;;  %v235_v54 = vsel %vm219_vm4, %v201_v36, %v227_v44  ;;  %v381_v25 = vpop.permute.xlu0 %380 }
  0xd2   :  { %v205_v39 = vpop.f32.mrf.mxu0 }
  0xd3   :  { %v206_v41 = vadd.f32 %v205_v39, %v77_v30  ;;  %vm221_vm2 = vcmp.ge.f32.partialorder %v211_v37, 0.0  ;;  %v229_v42 = vmul.f32 0.01, %v211_v37  ;;  %v234_v57 = vsel %vm218_vm5, %v196_v40, %v226_v48 }
  0xd5   :  { %v228_v45 = vmul.f32 0.01, %v206_v41  ;;  %v237_v46 = vsel %vm221_vm2, %v211_v37, %v229_v42  ;;  %vm220_vm3 = vcmp.ge.f32.partialorder %v206_v41, 0.0 }
  0xd6   :  { %525 = vmatprep.subr.mxu1 %v237_v46 }
  0xd7   :  { %526 = vmatpush3.msra.mxu1 %v237_v46  ;;  %v236_v49 = vsel %vm220_vm3, %v206_v41, %v228_v45 }
  0xd8   :  { %527 = vmatprep.subr.mxu1 %v236_v49 }
  0xd9   :  { %528 = vmatpush3.msra.mxu1 %v236_v49 }
  0xda   :  { %529 = vmatprep.subr.mxu1 %v235_v54 }
  0xdb   :  { %530 = vmatpush3.msra.mxu1 %v235_v54 }
  0xdc   :  { %531 = vmatprep.subr.mxu1 %v234_v57 }
  0xdd   :  { %532 = vmatpush3.msra.mxu1 %v234_v57 }
  0xde   :  { %533 = vmatprep.subr.mxu1 %v233_v59 }
  0xdf   :  { %534 = vmatpush3.msra.mxu1 %v233_v59 }
  0xe0   :  { %535 = vmatprep.subr.mxu1 %v232_v61 }
  0xe1   :  { %536 = vmatpush3.msra.mxu1 %v232_v61 }
  0xe2   :  { %537 = vmatprep.subr.mxu1 %v231_v62 }
  0xe3   :  { %538 = vmatpush3.msra.mxu1 %v231_v62 }
  0xe4   :  { %539 = vmatprep.subr.mxu1 %v230_v63 }
  0xe5   :  { %540 = vmatpush3.msra.mxu1 %v230_v63 }
  0xe6   :  { %542 = vmatmul.mubr.msk.f32.vlgmr.msra.gmra.mxu1 %vm266_vm1, %v239_v0 }
  0xe7   :  { %544 = vmatprep.mubr.msk.f32.mxu1 %vm266_vm1, %v240_v1 }
  0xea   :  { %545 = vmatmul.mubr.msk.f32.gmra.mxu1 %vm266_vm1, %v241_v2 }
 0x1a6   :  { %v543_v6 = vpop.f32.mrf.mxu1 }
 0x1a7   :  { %v351_v10 = vadd.f32 %v543_v6, %v254_v8 }
 0x1a8   :  { %v345_v7 = vpop.f32.mrf.mxu1 }
 0x1a9   :  { %v346_v14 = vadd.f32 %v345_v7, %v249_v12  ;;  %v369_v17 = vmul.f32 0.01, %v351_v10  ;;  %vm365_vm13 = vcmp.ge.f32.partialorder %v351_v10, 0.0 }
 0x1aa   :  { %v546_v9 = vpop.f32.mrf.mxu1 }
 0x1ab   :  { %v361_v11 = vadd.f32 %v546_v9, %v264_v4  ;;  %v368_v20 = vmul.f32 0.01, %v346_v14  ;;  %vm364_vm14 = vcmp.ge.f32.partialorder %v346_v14, 0.0  ;;  %v373_v22 = vsel %vm365_vm13, %v351_v10, %v369_v17 }
 0x1ac   :  { %v355_v13 = vpop.f32.mrf.mxu1 }
 0x1ad   :  { %vm367_vm11 = vcmp.ge.f32.partialorder %v361_v11, 0.0  ;;  %v371_v15 = vmul.f32 0.01, %v361_v11  ;;  %v356_v16 = vadd.f32 %v355_v13, %v259_v5  ;;  %v372_v24 = vsel %vm364_vm14, %v346_v14, %v368_v20 }
 0x1af   :  { %vm366_vm12 = vcmp.ge.f32.partialorder %v356_v16, 0.0  ;;  %v370_v18 = vmul.f32 0.01, %v356_v16  ;;  %v375_v19 = vsel %vm367_vm11, %v361_v11, %v371_v15 }
 0x1b0   :  { %548 = vmatpush3.msra.mxu0 %v375_v19 }
 0x1b1   :  { %549 = vmatprep.subr.mxu0 %v587_v3  ;;  %v374_v21 = vsel %vm366_vm12, %v356_v16, %v370_v18 }
 0x1b2   :  { %550 = vmatpush3.msra.mxu0 %v374_v21 }
 0x1b3   :  { %551 = vmatprep.subr.mxu0 %v587_v3 }
 0x1b4   :  { %552 = vmatpush3.msra.mxu0 %v373_v22 }
 0x1b5   :  { %553 = vmatprep.subr.mxu0 %v587_v3 }
 0x1b6   :  { %554 = vmatpush3.msra.mxu0 %v372_v24 }
 0x1b7   :  { %556 = vmatmul.mubr.msk.f32.vlgmr.msra.gmra.mxu0 %vm383_vm15, %v376_v23 }
 0x277   :  { %v453_v26 = vpop.f32.mrf.mxu0 }
 0x278   :  { %v454_v27 = vadd.f32 %v453_v26, %v381_v25 }
 0x279   :  { %v557_v28 = vpop.f32.mrf.mxu0 }
 0x27a   :  { %457 = vst [vmem:[#allocation2] sm:$0xff] %v454_v27 }
 0x27b   :  { %575 = shalt.err (!%p572_p4)
}
 0x27c   :  { %467 = dma.vmem_to_hbm [thread:$0]  %s465_s26, 128, %s733_s7, [#allocation3]  }
 0x27d   :  { %584 = dma.done.wait [#allocation3], 128  }
 0x27e   :  { %585 = vsyncadd [#allocation3], 4294967168 }
 0x27f   :  { %471 = vsyncpa [#allocation3], 1 }

</bundles_post_ra>
